<compile_context>
chip_gen: v7x
topology: tpu7x:2x2x1
jax: 0.10.0
libtpu: 0.0.40
codegen_flags: <defaults>
</compile_context>

<pallas_src>
import jax
import jax.numpy as jnp
from jax.experimental import pallas as pl
from jax.experimental.pallas import tpu as pltpu


def _round_up(x, m):
    return ((x + m - 1) // m) * m


def _time_embed_linear_kernel(xe_ref, w_ref, b_ref, o_ref):
    # One fused MXU matmul over the concatenated fan-in, f32 accumulate.
    acc = jnp.dot(xe_ref[...], w_ref[...], preferred_element_type=jnp.float32)
    o_ref[...] = (acc + b_ref[...]).astype(o_ref.dtype)


def prepare_time_embed_linear_params(weight, bias, in_dim):
    """One-time parameter prep (do at init, NOT per forward call).

    weight: [out_dim, in_dim + time_embed_dim]  (PyTorch Linear layout)
    bias:   [out_dim]

    Returns (w_t, b2):
      w_t: [fan_in, out_dim_p]   b2: [1, out_dim_p]
    with the out axis zero-padded to the next multiple of 128 (lane-dense).
    """
    out_dim, fan_in = weight.shape
    assert fan_in > in_dim, "weight fan-in must exceed in_dim"

    out_dim_p = _round_up(out_dim, 128)
    pad_n = out_dim_p - out_dim

    w_t = weight.T                               # [fan_in, out_dim]
    if pad_n:
        w_t = jnp.pad(w_t, ((0, 0), (0, pad_n)))
        b2 = jnp.pad(bias, (0, pad_n)).reshape(1, out_dim_p)
    else:
        b2 = bias.reshape(1, out_dim_p)
    return w_t, b2


def time_embed_linear_apply(x, emb, w_t, b2, *, out_dim, tile_m=None):
    """y = cat([x, emb], 1) @ W.T + b, given prepared (transposed/padded) params."""
    B, in_dim = x.shape
    Be, t_dim = emb.shape
    assert Be == B
    fan_in = in_dim + t_dim
    assert w_t.shape[0] == fan_in
    out_dim_p = w_t.shape[1]
    assert out_dim_p % 128 == 0 and out_dim <= out_dim_p

    # Concatenate activations once in the wrapper (tiny: B * fan_in elements).
    xe = jnp.concatenate([x, emb], axis=1)

    itemsize = jnp.dtype(x.dtype).itemsize

    # Batch tiling: sublane granularity only (8 rows for f32), at least two
    # tiles when B is large enough (v7x megacore), capped at 512 rows.
    if tile_m is None:
        if B <= 8:
            tile_m = B                                # single tile, no pad
        else:
            tile_m = min(512, max(8, _round_up(pl.cdiv(B, 2), 8)))

    # Shrink tile_m if the resident weight + double-buffered tiles would
    # exceed a conservative per-core VMEM budget (v7x has 64 MiB / TC).
    def _footprint(tm):
        return 2 * itemsize * (tm * fan_in + fan_in * out_dim_p
                               + out_dim_p + tm * out_dim_p)
    budget = 32 * 1024 * 1024
    while tile_m > 8 and _footprint(tile_m) > budget:
        tile_m = max(8, _round_up(tile_m // 2, 8))

    if tile_m == B:
        B_p = B                                       # block == full dim, no pad
    else:
        tile_m = _round_up(tile_m, 8)
        B_p = _round_up(B, tile_m)
        if B_p != B:
            xe = jnp.pad(xe, ((0, B_p - B), (0, 0)))

    grid = (B_p // tile_m,)

    vmem_limit = min(max(int(_footprint(tile_m) * 2) + (4 << 20), 16 << 20),
                     48 << 20)

    out_p = pl.pallas_call(
        _time_embed_linear_kernel,
        out_shape=jax.ShapeDtypeStruct((B_p, out_dim_p), x.dtype),
        grid_spec=pltpu.PrefetchScalarGridSpec(
            num_scalar_prefetch=0,
            grid=grid,
            in_specs=[
                pl.BlockSpec((tile_m, fan_in), lambda i: (i, 0)),      # [x|emb]
                pl.BlockSpec((fan_in, out_dim_p), lambda i: (0, 0)),   # W.T (resident)
                pl.BlockSpec((1, out_dim_p), lambda i: (0, 0)),        # bias (resident)
            ],
            out_specs=pl.BlockSpec((tile_m, out_dim_p), lambda i: (i, 0)),
        ),
        compiler_params=pltpu.CompilerParams(
            dimension_semantics=("parallel",),
            vmem_limit_bytes=vmem_limit),
    )(xe, w_t, b2)

    # Strip batch / out padding (no-op when nothing was padded).
    return out_p[:B, :out_dim]


def time_embed_linear(x, emb, weight, bias, *, tile_m=None):
    """Convenience path: preps params and applies.  Prefer the two-step path
    when the weights are static so the transpose/pad happens once."""
    w_t, b2 = prepare_time_embed_linear_params(weight, bias, x.shape[1])
    return time_embed_linear_apply(x, emb, w_t, b2,
                                   out_dim=bias.shape[0], tile_m=tile_m)


if __name__ == "__main__":
    # Small, module-consistent shapes; chosen to exercise both padding paths
    # (B=200 -> padded to 2 tiles of 104 rows, out_dim=96 -> padded to 128).
    B = 200
    in_dim = 48
    time_embed_dim = 32
    out_dim = 96

    key = jax.random.PRNGKey(0)
    kx, ke, kw, kb = jax.random.split(key, 4)

    x = jax.random.normal(kx, (B, in_dim), dtype=jnp.float32)
    emb = jax.random.normal(ke, (B, time_embed_dim), dtype=jnp.float32)

    # Deterministic param init mimicking torch.nn.Linear default:
    # U(-k, k), k = 1/sqrt(fan_in)
    fan_in = in_dim + time_embed_dim
    k = 1.0 / jnp.sqrt(jnp.float32(fan_in))
    weight = jax.random.uniform(kw, (out_dim, fan_in),
                                minval=-k, maxval=k, dtype=jnp.float32)
    bias = jax.random.uniform(kb, (out_dim,),
                              minval=-k, maxval=k, dtype=jnp.float32)

    # One-time param prep (hoisted out of the per-call path).
    w_t, b2 = prepare_time_embed_linear_params(weight, bias, in_dim)

    y = time_embed_linear_apply(x, emb, w_t, b2, out_dim=out_dim)
    y = jax.block_until_ready(y)

    # Pure-JAX reference (concat + linear), to verify semantics.
    y_ref = jnp.concatenate([x, emb], axis=1) @ weight.T + bias
    assert y.shape == (B, out_dim)
    assert jnp.allclose(y, y_ref, atol=1e-5, rtol=1e-5)

    # Convenience (prep-per-call) path must match too.
    y2 = jax.block_until_ready(time_embed_linear(x, emb, weight, bias))
    assert jnp.allclose(y2, y_ref, atol=1e-5, rtol=1e-5)

    # Small-batch (single-tile, no padding) path.
    y3 = jax.block_until_ready(
        time_embed_linear_apply(x[:5], emb[:5], w_t, b2, out_dim=out_dim))
    assert jnp.allclose(y3, y_ref[:5], atol=1e-5, rtol=1e-5)

    print("KERNEL_OK")
</pallas_src>

<mosaic_0001>
module attributes {stable_mosaic.version = 11 : i64} {
  func.func @_time_embed_linear_kernel(%arg0: i32, %arg1: memref<104x80xf32, #tpu.memory_space<vmem>>, %arg2: memref<80x128xf32, #tpu.memory_space<vmem>>, %arg3: memref<1x128xf32, #tpu.memory_space<vmem>>, %arg4: memref<104x128xf32, #tpu.memory_space<vmem>>) attributes {dimension_semantics = [#tpu.dimension_semantics<parallel>], iteration_bounds = array<i64: 2>, scalar_prefetch = 0 : i64, scratch_operands = 0 : i64, tpu.core_type = #tpu.core_type<tc>, window_params = [{transform_indices = @transform_0, window_bounds = array<i64: 104, 80>}, {pipeline_mode = #tpu.pipeline_mode<synchronous>, transform_indices = @transform_1, window_bounds = array<i64: 80, 128>}, {pipeline_mode = #tpu.pipeline_mode<synchronous>, transform_indices = @transform_2, window_bounds = array<i64: 1, 128>}, {transform_indices = @transform_3, window_bounds = array<i64: 104, 128>}]} {
    %c0 = arith.constant 0 : index
    %c0_0 = arith.constant 0 : index
    %0 = vector.load %arg1[%c0, %c0_0] : memref<104x80xf32, #tpu.memory_space<vmem>>, vector<104x80xf32>
    %c0_1 = arith.constant 0 : index
    %c0_2 = arith.constant 0 : index
    %1 = vector.load %arg2[%c0_1, %c0_2] : memref<80x128xf32, #tpu.memory_space<vmem>>, vector<80x128xf32>
    %cst = arith.constant dense<0.000000e+00> : vector<104x128xf32>
    %2 = tpu.matmul %0, %1, %cst {dimension_numbers = #tpu.dot_dimension_numbers<[1], [0], [0], [1], [0, 0, 1, 1], [], []>} : vector<104x80xf32>, vector<80x128xf32>, vector<104x128xf32> -> vector<104x128xf32>
    %c0_3 = arith.constant 0 : index
    %c0_4 = arith.constant 0 : index
    %3 = vector.load %arg3[%c0_3, %c0_4] : memref<1x128xf32, #tpu.memory_space<vmem>>, vector<1x128xf32>
    %4 = vector.broadcast %3 : vector<1x128xf32> to vector<104x128xf32>
    %5 = arith.addf %2, %4 : vector<104x128xf32>
    %c0_5 = arith.constant 0 : index
    %c0_6 = arith.constant 0 : index
    %6 = vector.load %arg4[%c0_5, %c0_6] : memref<104x128xf32, #tpu.memory_space<vmem>>, vector<104x128xf32>
    tpu.vector_store %arg4[%c0_5, %c0_6], %5 {strides = array<i32>} : memref<104x128xf32, #tpu.memory_space<vmem>>, vector<104x128xf32>,
    return
  }
  func.func @transform_0(%arg0: i32) -> (i32, i32) {
    %c0_i32 = arith.constant 0 : i32
    %c0_i32_0 = arith.constant 0 : i32
    return %arg0, %c0_i32 : i32, i32
  }
  func.func @transform_1(%arg0: i32) -> (i32, i32) {
    %c0_i32 = arith.constant 0 : i32
    %c0_i32_0 = arith.constant 0 : i32
    %c0_i32_1 = arith.constant 0 : i32
    return %c0_i32, %c0_i32_0 : i32, i32
  }
  func.func @transform_2(%arg0: i32) -> (i32, i32) {
    %c0_i32 = arith.constant 0 : i32
    %c0_i32_0 = arith.constant 0 : i32
    %c0_i32_1 = arith.constant 0 : i32
    return %c0_i32, %c0_i32_0 : i32, i32
  }
  func.func @transform_3(%arg0: i32) -> (i32, i32) {
    %c0_i32 = arith.constant 0 : i32
    %c0_i32_0 = arith.constant 0 : i32
    return %arg0, %c0_i32 : i32, i32
  }
}

</mosaic_0001>

<bundles_post_ra>
// kernel: tpu_custom_call.1
= control target key start
LH: loop header
LB: loop body
LE: loop exit
PB: predicated region body
PF: predicated region fallthrough
CT: control target
= control target key end

     0   :  { %8 = vsyncpa [#allocation3], 0  ;;  %s935_s0 = inlined_call_operand.vmem [shape: f32[208,80], index: 0, kind: input, shape index: {}]   ;;  %s936_s1 = inlined_call_operand.vmem [shape: f32[80,128], index: 1, kind: input, shape index: {}]   ;;  %s937_s2 = inlined_call_operand.vmem [shape: f32[1,128], index: 2, kind: input, shape index: {}]   ;;  %s938_s3 = inlined_call_operand.hbm [shape: f32[208,128], index: 3, kind: output, shape index: {}]  }
   0x1   :  { %10 = vsyncpa [#allocation3 + $0x1], 0  ;;  %s726_s12 = smov 0   ;;  %s728_s13 = smov 0  }
   0x2   :  { %s730_s14 = smov 0   ;;  %s732_s15 = smov 0  }
   0x3 LB: > { %s747_s16 = sadd.s32 4294967295, %s698_s15   ;;  %s461_s17 = sadd.s32 4294967294, %s698_s15   ;;  %s698_s15 = sphi %s732_s15, %s944_s15   ;;  %s694_s14 = sphi %s730_s14, %s943_s14   ;;  %s690_s13 = sphi %s728_s13, %s942_s13   ;;  %s686_s12 = sphi %s726_s12, %s941_s12  }
   0x4   : > { %s751_s18 = sadd.s32 1, %s698_s15   ;;  %s91_s19 = sadd.s32 1, %s694_s14 }
   0x5   : > { %s88_s20 = ssub.s32 %s698_s15, %s751_s18  ;;  %p101_p0 = scmp.ne.s32.totalorder %s694_s14, %s690_s13 }
   0x6   : > { %p89_p1 = scmp.eq.s32.totalorder %s88_s20, 0  ;;  %p102_p2 = scmp.eq.s32.totalorder %s747_s16, 1 }
   0x7   : > { %p107_p3 = scmp.ne.s32.totalorder %s690_s13, %s686_s12  ;;  %p108_p4 = scmp.eq.s32.totalorder %s461_s17, 1 }
   0x8   : > { %s762_s21 = scalar_select %p89_p1, %s694_s14, %s91_s19  }
   0x9   : > { %p764_p5 = por %p102_p2, %p101_p0  ;;  %p768_p6 = por %p108_p4, %p107_p3 }
   0xa   : > { %p464_p7 = scmp.ge.s32.totalorder %s698_s15, 1  ;;  %p141_p8 = scmp.lt.s32.totalorder %s698_s15, 3 }
   0xc   : > { %p142_p9 = pnand %p464_p7, %p141_p8 }
   0xd   : > { %v185_v0 = vld [vmem:[%s936_s1] sm:$0xff] (!%p142_p9)  ;;  %v186_v1 = vld [vmem:[%s936_s1 + $0x8] sm:$0xff] (!%p142_p9)  ;;  %v187_v2 = vld [vmem:[%s936_s1 + $0x10] sm:$0xff] (!%p142_p9)  ;;  %v700_v3 = vmov (!%p142_p9), 0.0|0.0   ;;  %s165_s5 = smul.u32 (!%p142_p9), 13, %s747_s16  ;;  %vm701_vm0 = vmmov (!%p142_p9), 0  }
   0xe   : > { %145 = sbr.rel (%p142_p9) target bundleno = 288 (0x120), region = 32  ;;  %566 = vmatprep.subr.bf16.mxu0 (!%p142_p9), %v700_v3  ;;  %v567_v4 = vpack.c.bf16 (!%p142_p9), %v186_v1, %v185_v0  ;;  %581 = vmatprep.subr.bf16.mxu1 (!%p142_p9), %v700_v3  ;;  %v188_v5 = vld [vmem:[%s936_s1 + $0x18] sm:$0xff] (!%p142_p9)  ;;  %v702_v6 = vmov (!%p142_p9), 0.0   ;;  %v189_v8 = vld [vmem:[%s936_s1 + $0x20] sm:$0xff] (!%p142_p9)  ;;  %v190_v9 = vld [vmem:[%s936_s1 + $0x28] sm:$0xff] (!%p142_p9)  ;;  %vm202_vm1 = vcmask (!%p142_p9), 654336  }
   0xf   : > { %527 = vmatprep.mubr.msk.f32.mxu0 (!%p142_p9), %vm701_vm0, %v702_v6  ;;  %548 = vmatprep.mubr.msk.f32.mxu1 (!%p142_p9), %vm701_vm0, %v702_v6  ;;  %v570_v7 = vpack.c.bf16 (!%p142_p9), %v188_v5, %v187_v2  ;;  %p166_p10 = scmp.lt.s32.totalorder (!%p142_p9), %s165_s5, 25  ;;  %v573_v10 = vpack.c.bf16 (!%p142_p9), %v190_v9, %v189_v8  ;;  %v191_v11 = vld [vmem:[%s936_s1 + $0x30] sm:$0xff] (!%p142_p9)  ;;  %v192_v12 = vld [vmem:[%s936_s1 + $0x38] sm:$0xff] (!%p142_p9)  ;;  %v193_v14 = vld [vmem:[%s936_s1 + $0x40] sm:$0xff] (!%p142_p9)  ;;  %s162_s4 = sand.u32 (!%p142_p9), 1, %s690_s13  }
  0x10   : > { %568 = vmatpush3.bf16.msra.mxu0 (!%p142_p9), %v567_v4  ;;  %586 = vmatpush3.bf16.msra.mxu1 (!%p142_p9), %v567_v4  ;;  %v576_v13 = vpack.c.bf16 (!%p142_p9), %v192_v12, %v191_v11  ;;  %v194_v15 = vld [vmem:[%s936_s1 + $0x48] sm:$0xff] (!%p142_p9)  ;;  %v466_v30 = vld [vmem:[%s937_s2] ss:$0 sm:$0xff] (!%p142_p9)  ;;  %s483_s9 = smul.u32 (!%p142_p9), 1664, %s747_s16  ;;  %s894_s16 = scalar_lea.sflag (!%p142_p9), [#allocation3], %s162_s4 }
  0x11   : > { %569 = vmatprep.subr.bf16.mxu0 (!%p142_p9), %v700_v3  ;;  %582 = vmatprep.subr.bf16.mxu1 (!%p142_p9), %v700_v3  ;;  %v579_v16 = vpack.c.bf16 (!%p142_p9), %v194_v15, %v193_v14  ;;  %s703_s24 = smov (!%p142_p9), [#allocation2]  }
  0x12   : > { %s887_s19 = scalar_lea.hbm (!%p142_p9), %s938_s3, %s483_s9  ;;  %s640_s25 = sshll.u32 (!%p142_p9), %s703_s24, 4  ;;  %s641_s25 = int_to_ptr.vmem [resolvable:$false] %s640_s25 }
  0x13   : > { %s642_s26 = scalar_lea.vmem (!%p142_p9), %s641_s25, 3328 }
  0x14   : > { %571 = vmatpush3.bf16.msra.mxu0 (!%p142_p9), %v570_v7  ;;  %587 = vmatpush3.bf16.msra.mxu1 (!%p142_p9), %v570_v7 }
  0x15   : > { %572 = vmatprep.subr.bf16.mxu0 %v700_v3  ;;  %583 = vmatprep.subr.bf16.mxu1 %v700_v3  ;;  %s946_s5 = smov (!%p166_p10, %s165_s5), 25 }
  0x16   : > { %s465_s27 = sshll.u32 %s946_s5, 3  ;;  %s591_s5 = smul.u32 104, %s162_s4 }
  0x17   : > { %s812_s30 = scalar_lea.vmem %s935_s0, %s465_s27 }
  0x18   : > { %574 = vmatpush3.bf16.msra.mxu0 %v573_v10  ;;  %588 = vmatpush3.bf16.msra.mxu1 %v573_v10  ;;  %v172_v17 = vld [vmem:[%s812_s30] sm:$0xff]  ;;  %v179_v18 = vld [vmem:[%s812_s30 + $0x38] sm:$0xff]  ;;  %v173_v19 = vld [vmem:[%s812_s30 + $0x8] sm:$0xff]  ;;  %s868_s8 = scalar_lea.vmem [#allocation2], %s591_s5 }
  0x19   : > { %575 = vmatprep.subr.bf16.mxu0 %v700_v3  ;;  %584 = vmatprep.subr.bf16.mxu1 %v700_v3  ;;  %v180_v20 = vld [vmem:[%s812_s30 + $0x40] sm:$0xff]  ;;  %v174_v21 = vld [vmem:[%s812_s30 + $0x10] sm:$0xff]  ;;  %v181_v22 = vld [vmem:[%s812_s30 + $0x48] sm:$0xff]  ;;  %s399_s10 = sshll.u32 %s868_s8, 4  ;;  %s889_s10 = int_to_ptr.vmem [resolvable:$true] %s399_s10 }
  0x1a   : > { %v175_v23 = vld [vmem:[%s812_s30 + $0x18] sm:$0xff]  ;;  %v182_v24 = vld [vmem:[%s812_s30 + $0x50] sm:$0xff]  ;;  %v176_v25 = vld [vmem:[%s812_s30 + $0x20] sm:$0xff]  ;;  %s636_s20 = scalar_lea.vmem %s889_s10, 1664  ;;  %p643_p0 = scmp.lt.s32.totalorder %s889_s10, %s641_s25 }
  0x1b   : > { %v183_v26 = vld [vmem:[%s812_s30 + $0x58] sm:$0xff]  ;;  %v177_v27 = vld [vmem:[%s812_s30 + $0x28] sm:$0xff]  ;;  %v184_v28 = vld [vmem:[%s812_s30 + $0x60] sm:$0xff]  ;;  %p637_p11 = scmp.ne.s32.totalorder %s889_s10, %s636_s20  ;;  %p644_p1 = scmp.lt.s32.totalorder %s642_s26, %s636_s20 }
  0x1c   : > { %577 = vmatpush3.bf16.msra.mxu0 %v576_v13  ;;  %589 = vmatpush3.bf16.msra.mxu1 %v576_v13  ;;  %v178_v29 = vld [vmem:[%s812_s30 + $0x30] sm:$0xff] }
  0x1d   : > { %578 = vmatprep.subr.bf16.mxu0 %v700_v3  ;;  %585 = vmatprep.subr.bf16.mxu1 %v700_v3  ;;  %p638_p12 = pnand %p637_p11, %p764_p5  ;;  %p645_p2 = por %p644_p1, %p643_p0 }
  0x1f   : > { %p639_p13 = pneg %p638_p12 }
  0x20   : > { %580 = vmatpush3.bf16.msra.mxu0 %v579_v16  ;;  %590 = vmatpush3.bf16.msra.mxu1 %v579_v16 }
  0x21   : > { %p646_p3 = pnand %p645_p2, %p639_p13 }
  0x23   : > { %528 = vmatmul.mubr.msk.f32.vlgmr.msra.gmra.mrb[0].mxu0 %vm202_vm1, %v172_v17  ;;  %549 = vmatmul.mubr.msk.f32.vlgmr.msra.gmra.mrb[0].mxu1 %vm202_vm1, %v179_v18 }
  0x24   : > { %530 = vmatprep.mubr.msk.f32.mxu0 %vm701_vm0, %v702_v6  ;;  %551 = vmatprep.mubr.msk.f32.mxu1 %vm701_vm0, %v702_v6 }
  0x27   : > { %531 = vmatmul.mubr.msk.f32.gmra.mrb[2].mxu0 %vm202_vm1, %v173_v19  ;;  %552 = vmatmul.mubr.msk.f32.gmra.mrb[2].mxu1 %vm202_vm1, %v180_v20 }
  0x28   : > { %533 = vmatprep.mubr.msk.f32.mxu0 %vm701_vm0, %v702_v6  ;;  %554 = vmatprep.mubr.msk.f32.mxu1 %vm701_vm0, %v702_v6 }
  0x2b   : > { %534 = vmatmul.mubr.msk.f32.gmra.mrb[4].mxu0 %vm202_vm1, %v174_v21  ;;  %555 = vmatmul.mubr.msk.f32.gmra.mrb[4].mxu1 %vm202_vm1, %v181_v22 }
  0x2c   : > { %536 = vmatprep.mubr.msk.f32.mxu0 %vm701_vm0, %v702_v6  ;;  %557 = vmatprep.mubr.msk.f32.mxu1 %vm701_vm0, %v702_v6 }
  0x2f   : > { %537 = vmatmul.mubr.msk.f32.gmra.mrb[6].mxu0 %vm202_vm1, %v175_v23  ;;  %558 = vmatmul.mubr.msk.f32.gmra.mrb[6].mxu1 %vm202_vm1, %v182_v24 }
  0x30   : > { %539 = vmatprep.mubr.msk.f32.mxu0 %vm701_vm0, %v702_v6  ;;  %560 = vmatprep.mubr.msk.f32.mxu1 %vm701_vm0, %v702_v6 }
  0x33   : > { %540 = vmatmul.mubr.msk.f32.gmra.mrb[8].mxu0 %vm202_vm1, %v176_v25  ;;  %561 = vmatmul.mubr.msk.f32.gmra.mrb[8].mxu1 %vm202_vm1, %v183_v26 }
  0x34   : > { %542 = vmatprep.mubr.msk.f32.mxu0 %vm701_vm0, %v702_v6  ;;  %563 = vmatprep.mubr.msk.f32.mxu1 %vm701_vm0, %v702_v6 }
  0x37   : > { %543 = vmatmul.mubr.msk.f32.gmra.mrb[10].mxu0 %vm202_vm1, %v177_v27  ;;  %564 = vmatmul.mubr.msk.f32.gmra.mrb[10].mxu1 %vm202_vm1, %v184_v28 }
  0x38   : > { %545 = vmatprep.mubr.msk.f32.mxu0 %vm701_vm0, %v702_v6 }
  0x3b   : > { %546 = vmatmul.mubr.msk.f32.gmra.mrb[12].mxu0 %vm202_vm1, %v178_v29 }
  0xf6   : > { %v308_v31 = vpop.f32.mrb[0].mxu0  ;;  %v343_v32 = vpop.f32.mrb[0].mxu1 }
  0xf7   : > { %v309_v33 = vadd.f32 %v466_v30, %v308_v31  ;;  %v529_v34 = vpop.f32.mrb[1].mxu0  ;;  %v344_v35 = vadd.f32 %v466_v30, %v343_v32  ;;  %v550_v36 = vpop.f32.mrb[1].mxu1 }
  0xf9   : > { %372 = vst [vmem:[%s868_s8] sm:$0xff] %v309_v33  ;;  %379 = vst [vmem:[%s868_s8 + $0x38] sm:$0xff] %v344_v35 }
  0xfa   : > { %v313_v37 = vpop.f32.mrb[2].mxu0  ;;  %v348_v38 = vpop.f32.mrb[2].mxu1 }
  0xfb   : > { %v314_v39 = vadd.f32 %v466_v30, %v313_v37  ;;  %v532_v40 = vpop.f32.mrb[3].mxu0  ;;  %v349_v41 = vadd.f32 %v466_v30, %v348_v38  ;;  %v553_v42 = vpop.f32.mrb[3].mxu1 }
  0xfd   : > { %373 = vst [vmem:[%s868_s8 + $0x8] sm:$0xff] %v314_v39  ;;  %380 = vst [vmem:[%s868_s8 + $0x40] sm:$0xff] %v349_v41 }
  0xfe   : > { %v318_v43 = vpop.f32.mrb[4].mxu0  ;;  %v353_v44 = vpop.f32.mrb[4].mxu1 }
  0xff   : > { %v319_v45 = vadd.f32 %v466_v30, %v318_v43  ;;  %v535_v46 = vpop.f32.mrb[5].mxu0  ;;  %v354_v47 = vadd.f32 %v466_v30, %v353_v44  ;;  %v556_v48 = vpop.f32.mrb[5].mxu1 }
 0x101   : > { %374 = vst [vmem:[%s868_s8 + $0x10] sm:$0xff] %v319_v45  ;;  %381 = vst [vmem:[%s868_s8 + $0x48] sm:$0xff] %v354_v47 }
 0x102   : > { %v323_v49 = vpop.f32.mrb[6].mxu0  ;;  %v358_v50 = vpop.f32.mrb[6].mxu1 }
 0x103   : > { %v324_v51 = vadd.f32 %v466_v30, %v323_v49  ;;  %v538_v52 = vpop.f32.mrb[7].mxu0  ;;  %v359_v53 = vadd.f32 %v466_v30, %v358_v50  ;;  %v559_v54 = vpop.f32.mrb[7].mxu1 }
 0x105   : > { %375 = vst [vmem:[%s868_s8 + $0x18] sm:$0xff] %v324_v51  ;;  %382 = vst [vmem:[%s868_s8 + $0x50] sm:$0xff] %v359_v53 }
 0x106   : > { %v328_v55 = vpop.f32.mrb[8].mxu0  ;;  %v363_v56 = vpop.f32.mrb[8].mxu1 }
 0x107   : > { %v329_v57 = vadd.f32 %v466_v30, %v328_v55  ;;  %v541_v58 = vpop.f32.mrb[9].mxu0  ;;  %v364_v59 = vadd.f32 %v466_v30, %v363_v56  ;;  %v562_v60 = vpop.f32.mrb[9].mxu1 }
 0x109   : > { %376 = vst [vmem:[%s868_s8 + $0x20] sm:$0xff] %v329_v57  ;;  %383 = vst [vmem:[%s868_s8 + $0x58] sm:$0xff] %v364_v59 }
 0x10a   : > { %v333_v61 = vpop.f32.mrb[10].mxu0  ;;  %v368_v62 = vpop.f32.mrb[10].mxu1 }
 0x10b   : > { %v334_v63 = vadd.f32 %v466_v30, %v333_v61  ;;  %v544_v0 = vpop.f32.mrb[11].mxu0  ;;  %v369_v1 = vadd.f32 %v466_v30, %v368_v62  ;;  %v565_v2 = vpop.f32.mrb[11].mxu1 }
 0x10d   : > { %377 = vst [vmem:[%s868_s8 + $0x28] sm:$0xff] %v334_v63  ;;  %384 = vst [vmem:[%s868_s8 + $0x60] sm:$0xff] %v369_v1 }
 0x10e   : > { %v338_v3 = vpop.f32.mrb[12].mxu0 }
 0x10f   : > { %v339_v4 = vadd.f32 %v466_v30, %v338_v3  ;;  %v547_v5 = vpop.f32.mrb[13].mxu0 }
 0x111   : > { %378 = vst [vmem:[%s868_s8 + $0x30] sm:$0xff] %v339_v4 }
 0x112   : > { %649 = shalt.err (!%p646_p3)
}
 0x113   : > { %s650_s27 = scalar_lea.hbm %s887_s19, 1664  ;;  %s654_s30 = scalar_lea.hbm %s938_s3, 3328 }
 0x114   : > { %p651_p4 = scmp.ne.s32.totalorder %s887_s19, %s650_s27  ;;  %p655_p9 = scmp.lt.u32.totalorder %s887_s19, %s938_s3 }
 0x115   : > { %p656_p10 = scmp.lt.u32.totalorder %s654_s30, %s650_s27  ;;  %p658_p12 = scmp.lt.u32.totalorder %s650_s27, %s887_s19 }
 0x116   : > { %p652_p7 = pnand %p651_p4, %p764_p5 }
 0x117   : > { %p657_p11 = por %p656_p10, %p655_p9 }
 0x118   : > { %p653_p8 = pneg %p652_p7 }
 0x119   : > { %p659_p13 = por %p658_p12, %p657_p11 }
 0x11b   : > { %p660_p0 = pnand %p659_p13, %p653_p8 }
 0x11d   : > { %663 = shalt.err (!%p660_p0)
}
 0x11e   : > { %s704_s6 = smov 128   ;;  %s705_s7 = smov 8  }
 0x11f   : > { %592 = dma.vmem_to_hbm [thread:$0]  (%p764_p5), %s889_s10, 1664, %s887_s19, %s894_s16, %s704_s6, %s704_s6, %s705_s7  }
 0x120 PF: > { %p598_p1 = scmp.ge.s32.totalorder %s698_s15, 2  ;;  %s414_s8 = sand.u32 1, %s686_s12  }
 0x121   : > { %s415_s9 = scalar_lea.sflag [#allocation3], %s414_s8 }
 0x122   : > { %p595_p2 = pnand %p598_p1, %p768_p6 }
 0x124   : > { %681 = dma.done.wait (!%p595_p2), %s415_s9, 1664  }
 0x125   : > { %683 = vsyncadd (!%p595_p2), %s415_s9, 4294965632  ;;  %p13_p3 = scmp.ge.s32.totalorder %s751_s18, 4   ;;  %s941_s12 = smov %s690_s13 }
 0x126   : > { %s942_s13 = smov %s694_s14  ;;  %s943_s14 = smov %s762_s21 }
 0x127   : > { %s944_s15 = smov %s751_s18  ;;  %15 = sbr.rel (!%p13_p3) target bundleno = 3 (0x3), region = 67 }
 0x12e   :  { %420 = vsyncpa [#allocation3], 1 }
 0x12f   :  { %422 = vsyncpa [#allocation3 + $0x1], 1 }

</bundles_post_ra>
